<compile_context>
chip_gen: v7x
topology: tpu7x:2x2x1
jax: 0.10.0
libtpu: 0.0.40
codegen_flags: <defaults>
</compile_context>

<pallas_src>
import math

import jax
import jax.numpy as jnp
from jax.experimental import pallas as pl
from jax.experimental.pallas import tpu as pltpu


def _round_up(n: int, m: int) -> int:
    return ((n + m - 1) // m) * m


# ---------------------------------------------------------------------------
# Parameter packing (host side, once at init)
# ---------------------------------------------------------------------------
def pack_params(params, state_dim: int, powers_dim: int, hidden: int):
    """Pack parameters for the transposed (batch-on-lanes) kernel.

    Returns:
      w_packed: (3, H, H) bf16 -- [W1^T (padded to H lanes), W2^T, W3^T]
      aux:      (H, 8)  f32   -- columns: [b1, b2, b3, w4_col, b4@[0,4], 0...]
    """
    (w1, b1), (w2, b2), (w3, b3), (w4, b4) = params
    din = state_dim + powers_dim
    H = hidden

    w_packed = jnp.zeros((3, H, H), jnp.float32)
    w_packed = w_packed.at[0, :, :din].set(w1.T.astype(jnp.float32))  # (H, Din)
    w_packed = w_packed.at[1].set(w2.T.astype(jnp.float32))           # (H, H)
    w_packed = w_packed.at[2].set(w3.T.astype(jnp.float32))           # (H, H)
    w_packed = w_packed.astype(jnp.bfloat16)

    aux = jnp.zeros((H, 8), jnp.float32)
    aux = aux.at[:, 0].set(jnp.reshape(b1, (-1,)).astype(jnp.float32))
    aux = aux.at[:, 1].set(jnp.reshape(b2, (-1,)).astype(jnp.float32))
    aux = aux.at[:, 2].set(jnp.reshape(b3, (-1,)).astype(jnp.float32))
    aux = aux.at[:, 3].set(jnp.reshape(w4, (-1,)).astype(jnp.float32))
    aux = aux.at[0, 4].set(jnp.reshape(b4, ()).astype(jnp.float32))
    return w_packed, aux


# ---------------------------------------------------------------------------
# Kernel (transposed layout: activations are (H sublanes, TB lanes))
# ---------------------------------------------------------------------------
def _make_critic_kernel(din: int, hidden: int):
    del hidden  # implicit in w_ref / aux_ref shapes

    def kernel(x_ref, w_ref, aux_ref, o_ref):
        f32 = jnp.float32
        bf16 = jnp.bfloat16

        x = x_ref[...]                                           # (Din, TB) bf16

        # fc1: single fused K=Din matmul, bf16 operands, f32 accumulation.
        h = jnp.dot(w_ref[0, :, :din], x, preferred_element_type=f32)  # (H, TB)
        h = jnp.maximum(h + aux_ref[:, 0:1], 0.0)                # f32 VPU

        # fc2
        h = jnp.dot(w_ref[1], h.astype(bf16), preferred_element_type=f32)
        h = jnp.maximum(h + aux_ref[:, 1:2], 0.0)

        # fc3
        h = jnp.dot(w_ref[2], h.astype(bf16), preferred_element_type=f32)
        h = jnp.maximum(h + aux_ref[:, 2:3], 0.0)

        # fc4 (out_features == 1): f32 VPU multiply + sublane (XLU) reduction,
        # producing one lane-dense output row.
        out = jnp.sum(h * aux_ref[:, 3:4], axis=0, keepdims=True)  # (1, TB)
        out = out + aux_ref[0:1, 4:5]                              # scalar bias
        o_ref[...] = out.astype(o_ref.dtype)

    return kernel


# ---------------------------------------------------------------------------
# Wrapper
# ---------------------------------------------------------------------------
def critic_forward(state, powers, w_packed, aux, *, batch_tile: int = 1024):
    """Forward pass. `w_packed`/`aux` come from pack_params()."""
    B, Ds = state.shape
    Dp = powers.shape[1]
    Din = Ds + Dp
    H = aux.shape[0]

    # Tile size: always a multiple of 128 lanes (valid block + lane-dense DMA),
    # large by default (amortize per-grid-step overhead), and sized so the
    # parallel grid axis gets >= 2 steps when B allows it (v7x: 2 TensorCores).
    batch_tile = max(128, (batch_tile // 128) * 128)
    half = _round_up(pl.cdiv(B, 2), 128)
    TB = min(batch_tile, max(128, half))
    Bp = _round_up(B, TB)

    # One fused wrapper-side layout pass: concat features, transpose to
    # batch-on-lanes, pad batch to the tile multiple, cast MXU operand to bf16.
    x_t = jnp.concatenate((state, powers), axis=1).T            # (Din, B)
    if Bp != B:
        x_t = jnp.pad(x_t, ((0, 0), (0, Bp - B)))
    x_t = x_t.astype(jnp.bfloat16)                               # (Din, Bp)

    kernel = _make_critic_kernel(Din, H)

    out_t = pl.pallas_call(
        kernel,
        out_shape=jax.ShapeDtypeStruct((1, Bp), jnp.float32),
        grid=(Bp // TB,),
        in_specs=[
            pl.BlockSpec((Din, TB), lambda i: (0, i)),           # x^T tile
            # Constant index_map -> weights fetched once and stay VMEM-resident.
            pl.BlockSpec(w_packed.shape, lambda i: (0, 0, 0)),   # bf16 weights
            pl.BlockSpec(aux.shape, lambda i: (0, 0)),           # f32 biases/w4
        ],
        out_specs=pl.BlockSpec((1, TB), lambda i: (0, i)),       # lane-dense row
        compiler_params=pltpu.CompilerParams(
            dimension_semantics=("parallel",)),
    )(x_t, w_packed, aux)

    return out_t[:, :B].T                                        # (B, 1) f32


# ---------------------------------------------------------------------------
# Init (matches torch.nn.Linear's U(-1/sqrt(fan_in), +1/sqrt(fan_in)))
# ---------------------------------------------------------------------------
def init_linear(key, fan_in, fan_out):
    kw, kb = jax.random.split(key)
    bound = 1.0 / math.sqrt(fan_in)
    # stored as [in, out] so the reference does x @ W
    w = jax.random.uniform(kw, (fan_in, fan_out), jnp.float32, -bound, bound)
    b = jax.random.uniform(kb, (1, fan_out), jnp.float32, -bound, bound)
    return w, b


if __name__ == "__main__":
    # Sizes implied by the module:
    #   len(STATE_KEYS) = 13, modules_amount = 4  ->  in_features = 13 + 4 - 1 = 16
    #   state carries 12 features, powers carries 4.
    hidden_size = 32
    state_dim = 12
    powers_dim = 4
    in_features = state_dim + powers_dim  # 16
    batch = 8

    root = jax.random.PRNGKey(0)
    k_state, k_powers, k1, k2, k3, k4 = jax.random.split(root, 6)

    state = jax.random.normal(k_state, (batch, state_dim), jnp.float32)
    powers = jax.random.normal(k_powers, (batch, powers_dim), jnp.float32)

    params = (
        init_linear(k1, in_features, hidden_size),
        init_linear(k2, hidden_size, hidden_size),
        init_linear(k3, hidden_size, hidden_size),
        init_linear(k4, hidden_size, 1),
    )

    w_packed, aux = pack_params(params, state_dim, powers_dim, hidden_size)

    out = critic_forward(state, powers, w_packed, aux)
    out = jax.block_until_ready(out)
    assert out.shape == (batch, 1), out.shape

    # Reference with the same numerics as the kernel (bf16 MXU operands,
    # f32 accumulation; final fc4 fully in f32).
    bf16 = jnp.bfloat16
    (w1, b1), (w2, b2), (w3, b3), (w4, b4) = params
    x = jnp.concatenate((state, powers), axis=1)

    def mm(a, w):
        return jnp.dot(a.astype(bf16), w.astype(bf16),
                       preferred_element_type=jnp.float32)

    r = jnp.maximum(mm(x, w1) + b1, 0.0)
    r = jnp.maximum(mm(r, w2) + b2, 0.0)
    r = jnp.maximum(mm(r, w3) + b3, 0.0)
    r = r @ w4 + b4
    assert jnp.allclose(out, r, atol=1e-4, rtol=1e-4)

    print("KERNEL_OK")
</pallas_src>

<mosaic_0001>
module attributes {stable_mosaic.version = 11 : i64} {
  func.func @kernel(%arg0: i32, %arg1: memref<16x128xbf16, #tpu.memory_space<vmem>>, %arg2: memref<3x32x32xbf16, #tpu.memory_space<vmem>>, %arg3: memref<32x8xf32, #tpu.memory_space<vmem>>, %arg4: memref<1x128xf32, #tpu.memory_space<vmem>>) attributes {dimension_semantics = [#tpu.dimension_semantics<parallel>], iteration_bounds = array<i64: 1>, scalar_prefetch = 0 : i64, scratch_operands = 0 : i64, tpu.core_type = #tpu.core_type<tc>, window_params = [{transform_indices = @transform_0, window_bounds = array<i64: 16, 128>}, {pipeline_mode = #tpu.pipeline_mode<synchronous>, transform_indices = @transform_1, window_bounds = array<i64: 3, 32, 32>}, {pipeline_mode = #tpu.pipeline_mode<synchronous>, transform_indices = @transform_2, window_bounds = array<i64: 32, 8>}, {transform_indices = @transform_3, window_bounds = array<i64: 1, 128>}]} {
    %c0 = arith.constant 0 : index
    %c0_0 = arith.constant 0 : index
    %0 = vector.load %arg1[%c0, %c0_0] : memref<16x128xbf16, #tpu.memory_space<vmem>>, vector<16x128xbf16>
    %c0_1 = arith.constant 0 : index
    %c0_2 = arith.constant 0 : index
    %c0_3 = arith.constant 0 : index
    %1 = vector.load %arg2[%c0_1, %c0_2, %c0_3] : memref<3x32x32xbf16, #tpu.memory_space<vmem>>, vector<1x32x16xbf16>
    %2 = vector.shape_cast %1 : vector<1x32x16xbf16> to vector<32x16xbf16>
    %cst = arith.constant dense<0.000000e+00> : vector<32x128xf32>
    %3 = tpu.matmul %2, %0, %cst {dimension_numbers = #tpu.dot_dimension_numbers<[1], [0], [0], [1], [0, 0, 1, 1], [], []>} : vector<32x16xbf16>, vector<16x128xbf16>, vector<32x128xf32> -> vector<32x128xf32>
    %c0_4 = arith.constant 0 : index
    %c0_5 = arith.constant 0 : index
    %4 = vector.load %arg3[%c0_4, %c0_5] : memref<32x8xf32, #tpu.memory_space<vmem>>, vector<32x1xf32>
    %5 = vector.broadcast %4 : vector<32x1xf32> to vector<32x128xf32>
    %6 = arith.addf %3, %5 : vector<32x128xf32>
    %cst_6 = arith.constant 0.000000e+00 : f32
    %7 = vector.broadcast %cst_6 : f32 to vector<32x128xf32>
    %8 = arith.maximumf %6, %7 : vector<32x128xf32>
    %c1 = arith.constant 1 : index
    %c0_7 = arith.constant 0 : index
    %c0_8 = arith.constant 0 : index
    %9 = vector.load %arg2[%c1, %c0_7, %c0_8] : memref<3x32x32xbf16, #tpu.memory_space<vmem>>, vector<1x32x32xbf16>
    %10 = vector.shape_cast %9 : vector<1x32x32xbf16> to vector<32x32xbf16>
    %11 = arith.truncf %8 : vector<32x128xf32> to vector<32x128xbf16>
    %cst_9 = arith.constant dense<0.000000e+00> : vector<32x128xf32>
    %12 = tpu.matmul %10, %11, %cst_9 {dimension_numbers = #tpu.dot_dimension_numbers<[1], [0], [0], [1], [0, 0, 1, 1], [], []>} : vector<32x32xbf16>, vector<32x128xbf16>, vector<32x128xf32> -> vector<32x128xf32>
    %c0_10 = arith.constant 0 : index
    %c1_11 = arith.constant 1 : index
    %13 = vector.load %arg3[%c0_10, %c1_11] : memref<32x8xf32, #tpu.memory_space<vmem>>, vector<32x1xf32>
    %14 = vector.broadcast %13 : vector<32x1xf32> to vector<32x128xf32>
    %15 = arith.addf %12, %14 : vector<32x128xf32>
    %cst_12 = arith.constant 0.000000e+00 : f32
    %16 = vector.broadcast %cst_12 : f32 to vector<32x128xf32>
    %17 = arith.maximumf %15, %16 : vector<32x128xf32>
    %c2 = arith.constant 2 : index
    %c0_13 = arith.constant 0 : index
    %c0_14 = arith.constant 0 : index
    %18 = vector.load %arg2[%c2, %c0_13, %c0_14] : memref<3x32x32xbf16, #tpu.memory_space<vmem>>, vector<1x32x32xbf16>
    %19 = vector.shape_cast %18 : vector<1x32x32xbf16> to vector<32x32xbf16>
    %20 = arith.truncf %17 : vector<32x128xf32> to vector<32x128xbf16>
    %cst_15 = arith.constant dense<0.000000e+00> : vector<32x128xf32>
    %21 = tpu.matmul %19, %20, %cst_15 {dimension_numbers = #tpu.dot_dimension_numbers<[1], [0], [0], [1], [0, 0, 1, 1], [], []>} : vector<32x32xbf16>, vector<32x128xbf16>, vector<32x128xf32> -> vector<32x128xf32>
    %c0_16 = arith.constant 0 : index
    %c2_17 = arith.constant 2 : index
    %22 = vector.load %arg3[%c0_16, %c2_17] : memref<32x8xf32, #tpu.memory_space<vmem>>, vector<32x1xf32>
    %23 = vector.broadcast %22 : vector<32x1xf32> to vector<32x128xf32>
    %24 = arith.addf %21, %23 : vector<32x128xf32>
    %cst_18 = arith.constant 0.000000e+00 : f32
    %25 = vector.broadcast %cst_18 : f32 to vector<32x128xf32>
    %26 = arith.maximumf %24, %25 : vector<32x128xf32>
    %c0_19 = arith.constant 0 : index
    %c3 = arith.constant 3 : index
    %27 = vector.load %arg3[%c0_19, %c3] : memref<32x8xf32, #tpu.memory_space<vmem>>, vector<32x1xf32>
    %28 = vector.broadcast %27 : vector<32x1xf32> to vector<32x128xf32>
    %29 = arith.mulf %26, %28 : vector<32x128xf32>
    %cst_20 = arith.constant dense<0.000000e+00> : vector<128xf32>
    %30 = vector.multi_reduction <add>, %29, %cst_20 [0] : vector<32x128xf32> to vector<128xf32>
    %31 = vector.shape_cast %30 : vector<128xf32> to vector<1x128xf32>
    %c0_21 = arith.constant 0 : index
    %c4 = arith.constant 4 : index
    %32 = vector.load %arg3[%c0_21, %c4] : memref<32x8xf32, #tpu.memory_space<vmem>>, vector<1x1xf32>
    %33 = vector.broadcast %32 : vector<1x1xf32> to vector<1x128xf32>
    %34 = arith.addf %31, %33 : vector<1x128xf32>
    %c0_22 = arith.constant 0 : index
    %c0_23 = arith.constant 0 : index
    %35 = vector.load %arg4[%c0_22, %c0_23] : memref<1x128xf32, #tpu.memory_space<vmem>>, vector<1x128xf32>
    tpu.vector_store %arg4[%c0_22, %c0_23], %34 {strides = array<i32>} : memref<1x128xf32, #tpu.memory_space<vmem>>, vector<1x128xf32>,
    return
  }
  func.func @transform_0(%arg0: i32) -> (i32, i32) {
    %c0_i32 = arith.constant 0 : i32
    %c0_i32_0 = arith.constant 0 : i32
    return %c0_i32, %arg0 : i32, i32
  }
  func.func @transform_1(%arg0: i32) -> (i32, i32, i32) {
    %c0_i32 = arith.constant 0 : i32
    %c0_i32_0 = arith.constant 0 : i32
    %c0_i32_1 = arith.constant 0 : i32
    %c0_i32_2 = arith.constant 0 : i32
    return %c0_i32, %c0_i32_0, %c0_i32_1 : i32, i32, i32
  }
  func.func @transform_2(%arg0: i32) -> (i32, i32) {
    %c0_i32 = arith.constant 0 : i32
    %c0_i32_0 = arith.constant 0 : i32
    %c0_i32_1 = arith.constant 0 : i32
    return %c0_i32, %c0_i32_0 : i32, i32
  }
  func.func @transform_3(%arg0: i32) -> (i32, i32) {
    %c0_i32 = arith.constant 0 : i32
    %c0_i32_0 = arith.constant 0 : i32
    return %c0_i32, %arg0 : i32, i32
  }
}

</mosaic_0001>

<bundles_post_ra>
// kernel: tpu_custom_call.1
= control target key start
LH: loop header
LB: loop body
LE: loop exit
PB: predicated region body
PF: predicated region fallthrough
CT: control target
= control target key end

     0   :  { %8 = vsyncpa [#allocation3], 0  ;;  %s568_s0 = inlined_call_operand.vmem [shape: bf16[16,128], index: 0, kind: input, shape index: {}]   ;;  %s569_s1 = inlined_call_operand.hbm [shape: bf16[3,32,32], index: 1, kind: input, shape index: {}]   ;;  %s570_s2 = inlined_call_operand.vmem [shape: f32[32,8], index: 2, kind: input, shape index: {}]   ;;  %s571_s3 = inlined_call_operand.hbm [shape: f32[1,128], index: 3, kind: output, shape index: {}]  }
   0x1   :  { %9 = vsyncpa [#allocation4], 0  ;;  %s493_s12 = smov [#allocation2]   ;;  %s445_s16 = scalar_lea.hbm %s569_s1, 768 }
   0x2   :  { %s17_s13 = sshll.u32 %s493_s12, 4  ;;  %p446_p0 = scmp.ne.s32.totalorder %s569_s1, %s445_s16  ;;  %s18_s13 = int_to_ptr.vmem [resolvable:$true] %s17_s13 }
   0x3   :  { %p449_p1 = scmp.lt.u32.totalorder %s445_s16, %s569_s1 }
   0x5   :  { %p451_p2 = pnand %p449_p1, %p446_p0 }
   0x7   :  { %454 = shalt.err (!%p451_p2)
}
   0x8   :  { %s455_s21 = scalar_lea.vmem %s18_s13, 768  ;;  %p460_p4 = scmp.lt.s32.totalorder %s18_s13, %s18_s13 }
   0x9   :  { %p456_p3 = scmp.ne.s32.totalorder %s18_s13, %s455_s21  ;;  %p461_p5 = scmp.lt.s32.totalorder %s455_s21, %s455_s21 }
   0xb   :  { %p462_p6 = por %p461_p5, %p460_p4 }
   0xd   :  { %p463_p7 = pnand %p462_p6, %p456_p3 }
   0xf   :  { %466 = shalt.err (!%p463_p7)
}
  0x10   :  { %s494_s22 = smov 64   ;;  %s495_s23 = smov 4  }
  0x11   :  { %23 = dma.hbm_to_vmem [thread:$0]  %s569_s1, 768, %s18_s13, [#allocation3], %s494_s22, %s494_s22, %s495_s23  }
  0x12   :  { %489 = dma.done.wait [#allocation3], 768  }
  0x13   :  { %490 = vsyncadd [#allocation3], 4294966528  ;;  %v496_v0 = vmov 0   ;;  %v438_v1 = vld [vmem:[%s568_s0] sm:$0xff]   ;;  %vm76_vm0 = vcmask 130048   ;;  %v440_v3 = vld [vmem:[#allocation2 + $0x8] sm:$0xff]  }
  0x14   :  { %428 = vset.pattern.permute.xlu0 %v496_v0  ;;  %429 = vset.pattern.permute.xlu1 %v496_v0  ;;  %v439_v2 = vld [vmem:[#allocation2] sm:$0xff]   ;;  %v38_v5 = vld [vmem:[%s570_s2 + $0x10] sm:$0xff]  ;;  %v37_v6 = vld [vmem:[%s570_s2 + $0x8] sm:$0xff]  ;;  %vm169_vm1 = vcmask 261120   ;;  %v497_v9 = vmov 1   ;;  %v498_v30 = vmov 2  }
  0x15   :  { %397 = vmatprep.subr.bf16.mxu0 %v438_v1  ;;  %399 = vmatprep.mubr.msk.bf16.mxu0 %vm76_vm0, %v439_v2  ;;  %v36_v4 = vld [vmem:[%s570_s2] sm:$0xff]  ;;  %v39_v7 = vld [vmem:[%s570_s2 + $0x18] sm:$0xff]  ;;  %v441_v8 = vld [vmem:[#allocation2 + $0x10] sm:$0xff]   ;;  %v499_v31 = vmov 3   ;;  %v500_v32 = vmov 4  }
  0x16   :  { %398 = vmatpush3.bf16.msra.mxu0 %v438_v1  ;;  %42 = vperm.xlu0 %428, %v36_v4   ;;  %v442_v28 = vld [vmem:[#allocation2 + $0x18] sm:$0xff]   ;;  %v443_v29 = vld [vmem:[#allocation2 + $0x20] sm:$0xff]   ;;  %v444_v52 = vld [vmem:[#allocation2 + $0x28] sm:$0xff]  }
  0x17   :  { %52 = vperm.xlu1 %429, %v38_v5   ;;  %407 = vmatprep.mubr.msk.bf16.mxu1 %vm169_vm1, %v441_v8  ;;  %v350_v33 = vld [vmem:[%s570_s2] sm:$0x1]  ;;  %s501_s2 = smov [#allocation5]  }
  0x18   :  { %s364_s9 = sshll.u32 %s501_s2, 4  ;;  %s365_s9 = int_to_ptr.vmem [resolvable:$true] %s364_s9 }
  0x19   :  { %400 = vmatmul.mubr.msk.bf16.vlgmr.msra.gmra.mrb[0].mxu0 %vm76_vm0, %v440_v3  ;;  %s467_s10 = scalar_lea.vmem %s365_s9, 16  ;;  %s471_s11 = scalar_lea.vmem %s365_s9, 32 }
  0x1a   :  { %47 = vperm.xlu0 %428, %v37_v6   ;;  %415 = vmatprep.mubr.msk.bf16.mxu0 %vm169_vm1, %v443_v29  ;;  %p468_p8 = scmp.ne.s32.totalorder %s365_s9, %s467_s10  ;;  %p472_p9 = scmp.lt.s32.totalorder %s365_s9, %s365_s9 }
  0x1b   :  { %57 = vperm.xlu1 %429, %v39_v7   ;;  %p473_p10 = scmp.lt.s32.totalorder %s471_s11, %s467_s10 }
  0x1d   :  { %p474_p11 = por %p473_p10, %p472_p9 }
  0x1e   :  { %430 = vset.pattern.permute.xlu0 %v497_v9 }
  0x1f   :  { %431 = vset.pattern.permute.xlu1 %v497_v9  ;;  %144 = vperm.xlu0 %430, %v36_v4   ;;  %p475_p12 = pnand %p474_p11, %p468_p8 }
  0x20   :  { %148 = vperm.xlu1 %431, %v37_v6  }
  0x23   :  { %156 = vperm.xlu0 %430, %v39_v7  }
  0x24   :  { %152 = vperm.xlu1 %431, %v38_v5  }
  0x27   :  { %433 = vset.pattern.permute.xlu0 %v498_v30 }
  0x28   :  { %432 = vset.pattern.permute.xlu1 %v498_v30  ;;  %241 = vperm.xlu0 %433, %v37_v6  }
  0x29   :  { %237 = vperm.xlu1 %432, %v36_v4  }
  0x2c   :  { %434 = vset.pattern.permute.xlu0 %v499_v31 }
  0x2d   :  { %245 = vperm.xlu1 %432, %v38_v5   ;;  %322 = vperm.xlu0 %434, %v36_v4  }
  0x31   :  { %249 = vperm.xlu1 %432, %v39_v7   ;;  %334 = vperm.xlu0 %434, %v39_v7  }
  0x35   :  { %435 = vset.pattern.permute.xlu1 %v499_v31  ;;  %437 = vset.pattern.permute.xlu0 %v500_v32 }
  0x36   :  { %326 = vperm.xlu1 %435, %v37_v6  }
  0x3a   :  { %330 = vperm.xlu1 %435, %v38_v5  }
  0x3e   :  { %436 = vset.pattern.permute.xlu1 %v500_v32 }
  0x3f   :  { %353 = vperm.xlu1 %436, %v350_v33  }
  0x95   :  { %v43_v11 = vpop.permute.xlu0 %42 }
  0x96   :  { %v53_v10 = vpop.permute.xlu1 %52 }
  0x99   :  { %v48_v18 = vpop.permute.xlu0 %47 }
  0x9a   :  { %v58_v13 = vpop.permute.xlu1 %57 }
  0x9e   :  { %v145_v35 = vpop.permute.xlu0 %144 }
  0x9f   :  { %v149_v34 = vpop.permute.xlu1 %148 }
  0xa2   :  { %v157_v38 = vpop.permute.xlu0 %156 }
  0xa3   :  { %v153_v36 = vpop.permute.xlu1 %152 }
  0xa7   :  { %v242_v56 = vpop.permute.xlu0 %241 }
  0xa8   :  { %v238_v53 = vpop.permute.xlu1 %237 }
  0xac   :  { %v246_v54 = vpop.permute.xlu1 %245  ;;  %v323_v63 = vpop.permute.xlu0 %322 }
  0xb0   :  { %v250_v55 = vpop.permute.xlu1 %249 }
  0xb5   :  { %v327_v58 = vpop.permute.xlu1 %326 }
  0xb9   :  { %v331_v6 = vpop.permute.xlu1 %330 }
  0xec   :  { %v401_v12 = vpop.f32.mrb[0].mxu0 }
  0xed   :  { %v126_v14 = vadd.f32 %v401_v12, %v53_v10  ;;  %v117_v15 = vpop.f32.mrb[1].mxu0  ;;  %v335_v10 = vpop.permute.xlu0 %334 }
  0xee   :  { %v118_v16 = vadd.f32 %v117_v15, %v43_v11  ;;  %v402_v17 = vpop.f32.mrb[2].mxu0 }
  0xef   :  { %v129_v19 = vadd.f32 %v402_v17, %v58_v13  ;;  %v120_v20 = vpop.f32.mrb[3].mxu0  ;;  %v134_v22 = vmax.f32 %v126_v14, 0.0 }
  0xf0   :  { %v121_v21 = vadd.f32 %v120_v20, %v48_v18  ;;  %v132_v24 = vmax.f32 %v118_v16, 0.0 }
  0xf1   :  { %v135_v23 = vmax.f32 %v129_v19, 0.0 }
  0xf2   :  { %v133_v25 = vmax.f32 %v121_v21, 0.0  ;;  %v354_v21 = vpop.permute.xlu1 %353 }
  0xf3   :  { %v142_v26 = vpack.c.bf16 %v135_v23, %v134_v22 }
  0xf4   :  { %v141_v27 = vpack.c.bf16 %v133_v25, %v132_v24 }
  0xf6   :  { %403 = vmatprep.subr.bf16.mxu1 %v141_v27 }
  0xf7   :  { %404 = vmatpush3.bf16.msra.mxu1 %v141_v27 }
  0xf8   :  { %405 = vmatprep.subr.bf16.mxu1 %v142_v26 }
  0xfb   :  { %406 = vmatpush3.bf16.msra.mxu1 %v142_v26 }
  0xfe   :  { %408 = vmatmul.mubr.msk.bf16.vlgmr.msra.gmra.mrb[0].mxu1 %vm169_vm1, %v442_v28 }
 0x1d1   :  { %v409_v37 = vpop.f32.mrb[0].mxu1 }
 0x1d2   :  { %v219_v39 = vadd.f32 %v409_v37, %v153_v36  ;;  %v210_v40 = vpop.f32.mrb[1].mxu1 }
 0x1d3   :  { %v211_v41 = vadd.f32 %v210_v40, %v145_v35  ;;  %v410_v42 = vpop.f32.mrb[2].mxu1 }
 0x1d4   :  { %v222_v43 = vadd.f32 %v410_v42, %v157_v38  ;;  %v213_v44 = vpop.f32.mrb[3].mxu1  ;;  %v227_v46 = vmax.f32 %v219_v39, 0.0 }
 0x1d5   :  { %v214_v45 = vadd.f32 %v213_v44, %v149_v34  ;;  %v225_v48 = vmax.f32 %v211_v41, 0.0 }
 0x1d6   :  { %v228_v47 = vmax.f32 %v222_v43, 0.0 }
 0x1d7   :  { %v226_v49 = vmax.f32 %v214_v45, 0.0 }
 0x1d8   :  { %v235_v50 = vpack.c.bf16 %v228_v47, %v227_v46 }
 0x1d9   :  { %v234_v51 = vpack.c.bf16 %v226_v49, %v225_v48 }
 0x1db   :  { %411 = vmatprep.subr.bf16.mxu0 %v234_v51 }
 0x1dc   :  { %412 = vmatpush3.bf16.msra.mxu0 %v234_v51 }
 0x1dd   :  { %413 = vmatprep.subr.bf16.mxu0 %v235_v50 }
 0x1e0   :  { %414 = vmatpush3.bf16.msra.mxu0 %v235_v50 }
 0x1e3   :  { %416 = vmatmul.mubr.msk.bf16.vlgmr.msra.gmra.mrb[4].mxu0 %vm169_vm1, %v444_v52 }
 0x2b6   :  { %v417_v57 = vpop.f32.mrb[4].mxu0 }
 0x2b7   :  { %v302_v59 = vpop.f32.mrb[5].mxu0  ;;  %v311_v60 = vadd.f32 %v417_v57, %v246_v54 }
 0x2b8   :  { %v303_v61 = vadd.f32 %v302_v59, %v238_v53  ;;  %v418_v62 = vpop.f32.mrb[6].mxu0 }
 0x2b9   :  { %v305_v0 = vpop.f32.mrb[7].mxu0  ;;  %v314_v2 = vadd.f32 %v418_v62, %v250_v55  ;;  %v319_v4 = vmax.f32 %v311_v60, 0.0 }
 0x2ba   :  { %v317_v1 = vmax.f32 %v303_v61, 0.0  ;;  %v306_v3 = vadd.f32 %v305_v0, %v242_v56 }
 0x2bb   :  { %v320_v8 = vmax.f32 %v314_v2, 0.0  ;;  %v339_v11 = vmul.f32 %v331_v6, %v319_v4 }
 0x2bc   :  { %v318_v5 = vmax.f32 %v306_v3, 0.0  ;;  %v337_v7 = vmul.f32 %v323_v63, %v317_v1 }
 0x2bd   :  { %v340_v14 = vmul.f32 %v335_v10, %v320_v8 }
 0x2be   :  { %v338_v9 = vmul.f32 %v327_v58, %v318_v5 }
 0x2c0   :  { %v341_v12 = vadd.f32 %v338_v9, %v337_v7 }
 0x2c2   :  { %v342_v13 = vadd.f32 %v341_v12, %v339_v11 }
 0x2c4   :  { %v343_v15 = vadd.f32 %v342_v13, %v340_v14 }
 0x2c6   :  { %v344_v16 = vrot.slane %v343_v15, 4 }
 0x2c8   :  { %v345_v17 = vadd.f32 %v344_v16, %v343_v15 }
 0x2ca   :  { %v346_v18 = vrot.slane %v345_v17, 2 }
 0x2cc   :  { %v347_v19 = vadd.f32 %v346_v18, %v345_v17 }
 0x2ce   :  { %v348_v20 = vrot.slane %v347_v19, 1 }
 0x2d0   :  { %v349_v22 = vadd.f32 %v348_v20, %v347_v19 }
 0x2d2   :  { %v356_v23 = vadd.f32 %v354_v21, %v349_v22 }
 0x2d4   :  { %357 = vst [vmem:[#allocation5] sm:$0x1] %v356_v23 }
 0x2d5   :  { %478 = shalt.err (!%p475_p12)
}
 0x2d6   :  { %s479_s14 = scalar_lea.hbm %s571_s3, 16 }
 0x2d7   :  { %p480_p13 = scmp.ne.s32.totalorder %s571_s3, %s479_s14  ;;  %p483_p0 = scmp.lt.u32.totalorder %s479_s14, %s571_s3 }
 0x2d9   :  { %p485_p1 = pnand %p483_p0, %p480_p13 }
 0x2db   :  { %488 = shalt.err (!%p485_p1)
}
 0x2dc   :  { %367 = dma.vmem_to_hbm [thread:$0]  %s365_s9, 16, %s571_s3, [#allocation4]  }
 0x2dd   :  { %491 = dma.done.wait [#allocation4], 16  }
 0x2de   :  { %492 = vsyncadd [#allocation4], 4294967280 }
 0x2df   :  { %371 = vsyncpa [#allocation3], 1 }
 0x2e0   :  { %372 = vsyncpa [#allocation4], 1 }

</bundles_post_ra>
